<compile_context>
chip_gen: v5e
topology: v5e:2x2
jax: 0.10.0
libtpu: 0.0.40
codegen_flags: <defaults>
</compile_context>

<pallas_src>
import functools

import jax
import jax.numpy as jnp
from jax import lax
from jax.experimental import pallas as pl
from jax.experimental.pallas import tpu as pltpu

INPUT_DIM = 10
HIDDEN_DIM = 100        # pre_output_dim
OUT_DIM = 1
K_AUG = INPUT_DIM + 1   # input dims + ones row (folds b1 into the layer-1 matmul)
CHUNK = 512             # in-kernel batch chunk (lanes); h chunk fits in ~52 vregs


def _mlp_reg_kernel(xT_ref, w1_ref, w2_ref, b2_ref, o_ref, *, chunk):
    """One batch tile, batch-on-lanes, chunked fused epilogue.

    xT_ref: (K_AUG, TILE_B)        bf16  [x.T ; ones] -- batch on the lane axis
    w1_ref: (HIDDEN_DIM, K_AUG)    bf16  [W1 | b1]    (resident across the grid)
    w2_ref: (OUT_DIM, HIDDEN_DIM)  bf16  regressor weight row (resident)
    b2_ref: (1, 1)                 f32   regressor bias scalar (SMEM)
    o_ref:  (1, TILE_B)            f32   lane-dense output tile
    """
    # Hoist the tiny resident weights into vregs once per grid step.
    w1 = w1_ref[...]
    w2 = w2_ref[...]
    b2 = b2_ref[0, 0]
    n_chunks = xT_ref.shape[1] // chunk

    def body(c, carry):
        off = pl.multiple_of(c * chunk, chunk)
        xc = xT_ref[:, pl.ds(off, chunk)]                          # (K_AUG, chunk) bf16
        # Layer 1 (+ bias via the ones row): single-pass bf16 MXU, f32 accumulate.
        h = jnp.dot(w1, xc, preferred_element_type=jnp.float32)    # (HIDDEN, chunk) f32
        h = jnp.maximum(h, 0.0)                                    # ReLU, stays in vregs
        # Regressor on the MXU: (1, HIDDEN) @ (HIDDEN, chunk); b2 folded into the store.
        y = jnp.dot(w2, h.astype(jnp.bfloat16),
                    preferred_element_type=jnp.float32)            # (1, chunk) f32
        o_ref[:, pl.ds(off, chunk)] = (y + b2).astype(o_ref.dtype)
        return carry

    lax.fori_loop(0, n_chunks, body, 0, unroll=True)


@functools.partial(jax.jit, static_argnames=("tile_b",))
def standard_model_reg_forward(x, w1, b1, w2, b2, tile_b=8192):
    """Pallas forward for StandardModelReg.

    Args (torch Linear layouts):
      x:  (B, INPUT_DIM) float32
      w1: (HIDDEN_DIM, INPUT_DIM) float32
      b1: (HIDDEN_DIM,) float32
      w2: (OUT_DIM, HIDDEN_DIM) float32
      b2: (OUT_DIM,) float32

    Returns:
      (y, one) with y of shape (B, 1, 1) and one of shape (1,) filled with 1.0,
      matching (x.unsqueeze(2), x.new().resize_(1).fill_(1.0)).
    """
    B = x.shape[0]

    # ---- static tile / chunk selection --------------------------------------
    B128 = pl.cdiv(B, 128) * 128                       # lane-padded batch
    if B128 <= CHUNK:
        tile_b_eff, chunk = B128, B128                 # single small tile
    else:
        # Cap at ~half the batch so v7x's two TensorCores both get grid steps,
        # then round up to a whole number of in-kernel chunks.
        tgt = max(CHUNK, min(int(tile_b), pl.cdiv(B128, 2)))
        tile_b_eff = pl.cdiv(tgt, CHUNK) * CHUNK
        chunk = CHUNK
    Bp = pl.cdiv(B, tile_b_eff) * tile_b_eff
    grid = (Bp // tile_b_eff,)

    # ---- wrapper-side layout plumbing (fusible into the input DMA) ----------
    xT = jnp.pad(x, ((0, Bp - B), (0, 0))).T                              # (10, Bp) f32
    xT_aug = jnp.concatenate(
        [xT, jnp.ones((1, Bp), x.dtype)], axis=0).astype(jnp.bfloat16)    # (11, Bp) bf16
    w1_aug = jnp.concatenate(
        [w1, b1.reshape(HIDDEN_DIM, 1)], axis=1).astype(jnp.bfloat16)     # (100, 11) bf16
    w2_row = w2.reshape(OUT_DIM, HIDDEN_DIM).astype(jnp.bfloat16)         # (1, 100) bf16
    b2_2d = b2.reshape(1, 1).astype(jnp.float32)

    yT = pl.pallas_call(
        functools.partial(_mlp_reg_kernel, chunk=chunk),
        out_shape=jax.ShapeDtypeStruct((1, Bp), jnp.float32),
        grid=grid,
        in_specs=[
            pl.BlockSpec((K_AUG, tile_b_eff), lambda i: (0, i)),          # x tile
            pl.BlockSpec((HIDDEN_DIM, K_AUG), lambda i: (0, 0)),          # [W1|b1] resident
            pl.BlockSpec((OUT_DIM, HIDDEN_DIM), lambda i: (0, 0)),        # w2 resident
            pl.BlockSpec(memory_space=pltpu.MemorySpace.SMEM),            # b2 scalar
        ],
        out_specs=pl.BlockSpec((1, tile_b_eff), lambda i: (0, i)),
        compiler_params=pltpu.CompilerParams(
            dimension_semantics=("parallel",),                 # megacore split on v7x
            allow_input_fusion=[True, False, False, False],    # fuse x pad/T/cast into DMA
        ),
    )(xT_aug, w1_aug, w2_row, b2_2d)

    # Glue: drop batch padding, match x.unsqueeze(2) and the constant 1.0 tensor.
    y = yT[0, :B].reshape(B, OUT_DIM, 1).astype(x.dtype)
    return y, jnp.ones((1,), dtype=x.dtype)


def init_params(key):
    """Deterministic init mimicking torch.nn.Linear defaults (U[-1/sqrt(fan_in), +])."""
    k1, k2, k3, k4 = jax.random.split(key, 4)
    lim1 = 1.0 / jnp.sqrt(jnp.float32(INPUT_DIM))
    lim2 = 1.0 / jnp.sqrt(jnp.float32(HIDDEN_DIM))
    w1 = jax.random.uniform(k1, (HIDDEN_DIM, INPUT_DIM), jnp.float32, -lim1, lim1)
    b1 = jax.random.uniform(k2, (HIDDEN_DIM,), jnp.float32, -lim1, lim1)
    w2 = jax.random.uniform(k3, (OUT_DIM, HIDDEN_DIM), jnp.float32, -lim2, lim2)
    b2 = jax.random.uniform(k4, (OUT_DIM,), jnp.float32, -lim2, lim2)
    return w1, b1, w2, b2


if __name__ == "__main__":
    key = jax.random.PRNGKey(0)
    kx, kp = jax.random.split(key)
    w1, b1, w2, b2 = init_params(kp)

    def ref_f32(x):
        # exact fp32 torch semantics: relu(x @ W1.T + b1) @ W2.T + b2, unsqueeze(2)
        h = jnp.maximum(x @ w1.T + b1, 0.0)
        return (h @ w2.T + b2)[:, :, None]

    def ref_bf16(x):
        # same roundings as the kernel: bf16 operands, f32 accumulation, bias folded.
        w1a = jnp.concatenate([w1, b1.reshape(-1, 1)], axis=1).astype(jnp.bfloat16)
        xa = jnp.concatenate([x, jnp.ones((x.shape[0], 1), x.dtype)],
                             axis=1).astype(jnp.bfloat16)
        h = jnp.dot(xa, w1a.T, preferred_element_type=jnp.float32)
        h = jnp.maximum(h, 0.0)
        y = jnp.dot(h.astype(jnp.bfloat16), w2.astype(jnp.bfloat16).T,
                    preferred_element_type=jnp.float32) + b2
        return y[:, :, None]

    for B in (8, 1536):   # small case + multi-tile / multi-chunk case
        x = jax.random.normal(jax.random.fold_in(kx, B), (B, INPUT_DIM),
                              dtype=jnp.float32)
        y, one = standard_model_reg_forward(x, w1, b1, w2, b2)
        y = jax.block_until_ready(y)
        one = jax.block_until_ready(one)

        assert y.shape == (B, OUT_DIM, 1)
        assert one.shape == (1,) and float(one[0]) == 1.0
        # Tight check vs. a reference that applies the same bf16 roundings.
        assert jnp.allclose(y, ref_bf16(x), atol=2e-3, rtol=2e-3), \
            "kernel deviates from bf16-matched reference"
        # Relaxed check vs. the exact fp32 PyTorch-semantics reference
        # (deliberate bf16-operand drift, per perf review).
        assert jnp.allclose(y, ref_f32(x), atol=6e-2, rtol=6e-2), \
            "kernel drifts too far from fp32 reference"

    print("KERNEL_OK")
</pallas_src>

<mosaic_0001>
module attributes {stable_mosaic.version = 11 : i64} {
  func.func @_mlp_reg_kernel(%arg0: i32, %arg1: memref<11x128xbf16, #tpu.memory_space<vmem>>, %arg2: memref<100x11xbf16, #tpu.memory_space<vmem>>, %arg3: memref<1x100xbf16, #tpu.memory_space<vmem>>, %arg4: memref<1x1xf32, #tpu.memory_space<smem>>, %arg5: memref<1x128xf32, #tpu.memory_space<vmem>>) attributes {dimension_semantics = [#tpu.dimension_semantics<parallel>], iteration_bounds = array<i64: 1>, scalar_prefetch = 0 : i64, scratch_operands = 0 : i64, tpu.core_type = #tpu.core_type<tc>, window_params = [{transform_indices = @transform_0, window_bounds = array<i64: 11, 128>}, {pipeline_mode = #tpu.pipeline_mode<synchronous>, transform_indices = @transform_1, window_bounds = array<i64: 100, 11>}, {pipeline_mode = #tpu.pipeline_mode<synchronous>, transform_indices = @transform_2, window_bounds = array<i64: 1, 100>}, {transform_indices = @transform_3, window_bounds = array<i64: 1, 1>}, {transform_indices = @transform_4, window_bounds = array<i64: 1, 128>}]} {
    %c0 = arith.constant 0 : index
    %c0_0 = arith.constant 0 : index
    %0 = vector.load %arg2[%c0, %c0_0] : memref<100x11xbf16, #tpu.memory_space<vmem>>, vector<100x11xbf16>
    %c0_1 = arith.constant 0 : index
    %c0_2 = arith.constant 0 : index
    %1 = vector.load %arg3[%c0_1, %c0_2] : memref<1x100xbf16, #tpu.memory_space<vmem>>, vector<1x100xbf16>
    %c0_3 = arith.constant 0 : index
    %c0_4 = arith.constant 0 : index
    %2 = memref.load %arg4[%c0_3, %c0_4] : memref<1x1xf32, #tpu.memory_space<smem>>
    %c0_i32 = arith.constant 0 : i32
    %c128_i32 = arith.constant 128 : i32
    %3 = arith.muli %c0_i32, %c128_i32 : i32
    %4 = tpu.assume_multiple %3, 128 : i32
    %c0_5 = arith.constant 0 : index
    %5 = arith.index_cast %4 : i32 to index
    %6 = vector.load %arg1[%c0_5, %5] : memref<11x128xbf16, #tpu.memory_space<vmem>>, vector<11x128xbf16>
    %cst = arith.constant dense<0.000000e+00> : vector<100x128xf32>
    %7 = tpu.matmul %0, %6, %cst {dimension_numbers = #tpu.dot_dimension_numbers<[1], [0], [0], [1], [0, 0, 1, 1], [], []>} : vector<100x11xbf16>, vector<11x128xbf16>, vector<100x128xf32> -> vector<100x128xf32>
    %cst_6 = arith.constant 0.000000e+00 : f32
    %8 = vector.broadcast %cst_6 : f32 to vector<100x128xf32>
    %9 = arith.maximumf %7, %8 : vector<100x128xf32>
    %10 = arith.truncf %9 : vector<100x128xf32> to vector<100x128xbf16>
    %cst_7 = arith.constant dense<0.000000e+00> : vector<1x128xf32>
    %11 = tpu.matmul %1, %10, %cst_7 {dimension_numbers = #tpu.dot_dimension_numbers<[1], [0], [0], [1], [0, 0, 1, 1], [], []>} : vector<1x100xbf16>, vector<100x128xbf16>, vector<1x128xf32> -> vector<1x128xf32>
    %12 = vector.broadcast %2 : f32 to vector<1x128xf32>
    %13 = arith.addf %11, %12 : vector<1x128xf32>
    %c0_8 = arith.constant 0 : index
    %14 = arith.index_cast %4 : i32 to index
    %15 = vector.load %arg5[%c0_8, %14] : memref<1x128xf32, #tpu.memory_space<vmem>>, vector<1x128xf32>
    tpu.vector_store %arg5[%c0_8, %14], %13 {strides = array<i32>} : memref<1x128xf32, #tpu.memory_space<vmem>>, vector<1x128xf32>,
    %c1_i32 = arith.constant 1 : i32
    return
  }
  func.func @transform_0(%arg0: i32) -> (i32, i32) {
    %c0_i32 = arith.constant 0 : i32
    %c0_i32_0 = arith.constant 0 : i32
    return %c0_i32, %arg0 : i32, i32
  }
  func.func @transform_1(%arg0: i32) -> (i32, i32) {
    %c0_i32 = arith.constant 0 : i32
    %c0_i32_0 = arith.constant 0 : i32
    %c0_i32_1 = arith.constant 0 : i32
    return %c0_i32, %c0_i32_0 : i32, i32
  }
  func.func @transform_2(%arg0: i32) -> (i32, i32) {
    %c0_i32 = arith.constant 0 : i32
    %c0_i32_0 = arith.constant 0 : i32
    %c0_i32_1 = arith.constant 0 : i32
    return %c0_i32, %c0_i32_0 : i32, i32
  }
  func.func @transform_3(%arg0: i32) -> (i32, i32) {
    %c0_i32 = arith.constant 0 : i32
    %c0_i32_0 = arith.constant 0 : i32
    %c0_i32_1 = arith.constant 0 : i32
    return %c0_i32, %c0_i32_0 : i32, i32
  }
  func.func @transform_4(%arg0: i32) -> (i32, i32) {
    %c0_i32 = arith.constant 0 : i32
    %c0_i32_0 = arith.constant 0 : i32
    return %c0_i32, %arg0 : i32, i32
  }
}

</mosaic_0001>

<bundles_post_ra>
// kernel: standard_model_reg_forward.2
= control target key start
LH: loop header
LB: loop body
LE: loop exit
PB: predicated region body
PF: predicated region fallthrough
CT: control target
= control target key end

     0   :  { %s358_s0 = inlined_call_operand.vmem [shape: bf16[100,11], index: 0, kind: input, shape index: {}]   ;;  %s359_s1 = inlined_call_operand.vmem [shape: bf16[1,100], index: 1, kind: input, shape index: {}]   ;;  %s360_s2 = inlined_call_operand.<no memory space> [shape: f32[1,1], index: 2, kind: input, shape index: {}]   ;;  %s361_s3 = inlined_call_operand.vmem [shape: bf16[10,128], index: 3, kind: input, shape index: {}]   ;;  %s362_s4 = inlined_call_operand.<no memory space> [shape: bf16[], index: 4, kind: input, shape index: {}]   ;;  %s363_s5 = inlined_call_operand.vmem [shape: f32[1,128], index: 5, kind: output, shape index: {}]  }
   0x1   :  { %v10_v0 = vstv %s362_s4 }
   0x2   :  { %v11_v1 = vunpack.i.l.bf16 %v10_v0 }
   0x3   :  { %v24_v2 = vld [vmem:[%s361_s3] sm:$0xf]  ;;  %v234_v3 = vld [vmem:[%s361_s3 + $0x4] sm:$0xf]  ;;  %v49_v4 = vlaneseq  ;;  %vm137_vm1 = vcmask 1044480   ;;  %vm138_vm2 = vcmask 1045504   ;;  %v207_v62 = vstv %s360_s2 }
   0x4   :  { %35 = vst [vmem:[#allocation8] sm:$0xf] %v24_v2  ;;  %v47_v6 = vunpack.c.l.bf16 %v234_v3  ;;  %v281_v10 = vmov 65535   ;;  %v275_v17 = vld [vmem:[%s358_s0 + $0x20] sm:$0xff]  ;;  %vm115_vm3 = vcmask 89088   ;;  %v274_v19 = vld [vmem:[%s358_s0 + $0x18] sm:$0xff] }
   0x5   :  { %v50_v5 = vshrl.u32 %v49_v4, 7  ;;  %v139_v11 = vsel %vm137_vm1, 4294967295, %v281_v10  ;;  %v271_v18 = vld [vmem:[%s358_s0] sm:$0xff]  ;;  %v276_v20 = vld [vmem:[%s358_s0 + $0x28] sm:$0xff]  ;;  %v72_v22 = vld [vmem:[%s358_s0 + $0x30] sm:$0x3] }
   0x6   :  { %v140_v14 = vsel %vm138_vm2, %v139_v11, 0  ;;  %v272_v21 = vld [vmem:[%s358_s0 + $0x8] sm:$0xff]  ;;  %v102_v23 = vunpack.c.l.b16 %v72_v22  ;;  %v273_v25 = vld [vmem:[%s358_s0 + $0x10] sm:$0xff]  ;;  %vm212_vm4 = vcmask 1041408   ;;  %v73_v61 = vld [vmem:[%s359_s1] sm:$0x1] }
   0x7   :  { %v51_v7 = vadd.s32 8, %v50_v5  ;;  %vm208_vm5 = vcmask 818176  }
   0x8   :  { %v109_v24 = vpack.c.b16 %v102_v23, %v102_v23 }
   0x9   :  { %vm52_vm0 = vcmp.lt.s32.totalorder %v51_v7, 10 }
   0xa   :  { %v53_v8 = vsel %vm52_vm0, %v47_v6, %v11_v1 }
   0xb   :  { %v55_v9 = vpack.c.bf16 0.0, %v53_v8  ;;  %v261_v12 = vld [vmem:[#allocation8] sm:$0xf] }
   0xd   :  { %58 = vst [vmem:[#allocation8 + $0x4] sm:$0xf] %v55_v9 }
  0x14   :  { %v277_v13 = vld [vmem:[#allocation8] sm:$0x30] }
  0x15   :  { %v262_v15 = vor.u32 %v277_v13, %v261_v12 }
  0x17   :  { %v142_v16 = vand.u32 %v262_v15, %v140_v14 }
  0x19   :  { %279 = vmatpush.bf16.msra.mxu3 %v142_v16  ;;  %151 = vmatpush.bf16.msra.mxu0 %v142_v16 }
  0x1a   :  { %278 = vmatpush.bf16.msra.mxu2 %v142_v16 }
  0x1c   :  { %267 = vmatmul.msk.bf16.vlgmr.msra.gmra.mxu3 %vm115_vm3, %v275_v17  ;;  %263 = vmatmul.msk.bf16.vlgmr.msra.gmra.mxu0 %vm115_vm3, %v271_v18 }
  0x1d   :  { %266 = vmatmul.msk.bf16.vlgmr.msra.gmra.mxu2 %vm115_vm3, %v274_v19 }
  0x2c   :  { %268 = vmatmul.msk.bf16.gmra.mxu3 %vm115_vm3, %v276_v20  ;;  %264 = vmatmul.msk.bf16.gmra.mxu0 %vm115_vm3, %v272_v21 }
  0x3c   :  { %269 = vmatmul.msk.bf16.gmra.mxu3 %vm115_vm3, %v109_v24  ;;  %265 = vmatmul.msk.bf16.gmra.mxu0 %vm115_vm3, %v273_v25 }
  0x99   :  { %v153_v26 = vpop.f32.mrf.mxu0 }
  0x9a   :  { %v187_v57 = vmax.f32 %v153_v26, 0.0 }
  0x9f   :  { %v173_v27 = vpop.f32.mrf.mxu3 }
  0xa0   :  { %v168_v34 = vpop.f32.mrf.mxu2  ;;  %v195_v46 = vmax.f32 %v173_v27, 0.0 }
  0xa1   :  { %v155_v28 = vpop.f32.mrf.mxu0  ;;  %v193_v47 = vmax.f32 %v168_v34, 0.0 }
  0xa2   :  { %v188_v58 = vmax.f32 %v155_v28, 0.0 }
  0xa4   :  { %v200_v60 = vpack.c.bf16 %v188_v58, %v187_v57 }
  0xa7   :  { %v175_v29 = vpop.f32.mrf.mxu3 }
  0xa8   :  { %v196_v42 = vmax.f32 %v175_v29, 0.0  ;;  %v170_v45 = vpop.f32.mrf.mxu2 }
  0xa9   :  { %v158_v30 = vpop.f32.mrf.mxu0  ;;  %v194_v48 = vmax.f32 %v170_v45, 0.0 }
  0xaa   :  { %v204_v49 = vpack.c.bf16 %v196_v42, %v195_v46  ;;  %v189_v54 = vmax.f32 %v158_v30, 0.0 }
  0xab   :  { %v203_v53 = vpack.c.bf16 %v194_v48, %v193_v47 }
  0xaf   :  { %v178_v31 = vpop.f32.mrf.mxu3 }
  0xb0   :  { %v197_v41 = vmax.f32 %v178_v31, 0.0 }
  0xb1   :  { %v160_v33 = vpop.f32.mrf.mxu0 }
  0xb2   :  { %v190_v55 = vmax.f32 %v160_v33, 0.0 }
  0xb4   :  { %v201_v59 = vpack.c.bf16 %v190_v55, %v189_v54 }
  0xb7   :  { %v180_v32 = vpop.f32.mrf.mxu3 }
  0xb8   :  { %v198_v39 = vmax.f32 %v180_v32, 0.0 }
  0xb9   :  { %v163_v38 = vpop.f32.mrf.mxu0 }
  0xba   :  { %v205_v44 = vpack.c.bf16 %v198_v39, %v197_v41  ;;  %v191_v51 = vmax.f32 %v163_v38, 0.0 }
  0xbf   :  { %v183_v35 = vpop.f32.mrf.mxu3 }
  0xc0   :  { %v199_v36 = vmax.f32 %v183_v35, 0.0 }
  0xc1   :  { %v165_v50 = vpop.f32.mrf.mxu0 }
  0xc2   :  { %v206_v37 = vpack.c.bf16 %v199_v36, %v199_v36  ;;  %v192_v52 = vmax.f32 %v165_v50, 0.0 }
  0xc4   :  { %v214_v40 = vsel %vm212_vm4, %v206_v37, 0  ;;  %v202_v56 = vpack.c.bf16 %v192_v52, %v191_v51 }
  0xc5   :  { %217 = vmatpush.bf16.msra.mxu1 %v214_v40 }
  0xc7   :  { %v185_v43 = vpop.f32.mrf.mxu3 }
  0xc9   :  { %218 = vmatpush.bf16.msra.mxu1 %v205_v44 }
  0xcd   :  { %219 = vmatpush.bf16.msra.mxu1 %v204_v49 }
  0xd1   :  { %220 = vmatpush.bf16.msra.mxu1 %v203_v53 }
  0xd5   :  { %221 = vmatpush.bf16.msra.mxu1 %v202_v56 }
  0xd9   :  { %222 = vmatpush.bf16.msra.mxu1 %v201_v59 }
  0xdd   :  { %223 = vmatpush.bf16.msra.mxu1 %v200_v60 }
  0xe0   :  { %270 = vmatmul.msk.bf16.vlgmr.msra.gmra.mxu1 %vm208_vm5, %v73_v61 }
 0x15d   :  { %v225_v63 = vpop.f32.mrf.mxu1 }
 0x15e   :  { %v226_v0 = vadd.f32 %v225_v63, %v207_v62 }
 0x160   :  { %229 = vst [vmem:[%s363_s5] sm:$0x1] %v226_v0 }
 0x165   :  { %v227_v1 = vpop.f32.mrf.mxu1 }

</bundles_post_ra>
